<compile_context>
chip_gen: v7x
topology: tpu7x:2x2x1
jax: 0.10.0
libtpu: 0.0.40
codegen_flags: <defaults>
</compile_context>

<pallas_src>
import functools

import jax
import jax.numpy as jnp
from jax import lax
from jax.experimental import pallas as pl
from jax.experimental.pallas import tpu as pltpu


def _pick_row_block(H, W, target_rows=2048):
    """Row-block height TH: divides H, gives a lane/sublane-friendly output
    block, keeps the im2col intermediate (TH*W x 9*C_in) well under the scoped
    VMEM limit, and prefers >=2 row blocks per image so the software pipeline
    reaches steady state and v7x's two TensorCores stream disjoint slabs."""
    cands = [d for d in range(1, H + 1)
             if H % d == 0 and ((d * W) % 16 == 0 or d == H)]
    budget = [d for d in cands if d * W <= target_rows]
    if not budget:
        return min(cands)
    multi = [d for d in budget if H // d >= 2]
    return max(multi) if multi else max(budget)


def _rpn_kernel(top_ref, body_ref, bot_ref, wconv_ref, bconv_ref,
                whead_ref, bhead_ref, out_ref, *, TH, W):
    """One (batch, row-block) tile per grid step.

    top_ref  : (1, W, C_in)       f32  row above the block (clamped; zeroed if r==0)
    body_ref : (TH, W, C_in)      f32  the block's rows
    bot_ref  : (1, W, C_in)       f32  row below the block (clamped; zeroed if last)
    wconv_ref: (9*C_in, C_midp)   bf16 im2col-flattened 3x3 conv weights, N padded to 128
    bconv_ref: (1, C_midp)        f32
    whead_ref: (C_midp, C_pad)    bf16 fused (cls||box) 1x1 head, K and N padded to 128
    bhead_ref: (1, C_pad)         f32
    out_ref  : (TH*W, C_pad)      bf16 lane-dense packed head output
    """
    C_in = body_ref.shape[-1]
    r = pl.program_id(1)
    nR = pl.num_programs(1)

    # In-kernel halo handling: the halo-row blocks were fetched with clamped
    # indices, so rows that fall outside the image are simply multiplied by 0.
    top_keep = (r > 0).astype(jnp.float32)
    bot_keep = (r < nR - 1).astype(jnp.float32)
    top = (top_ref[...] * top_keep).astype(jnp.bfloat16)      # (1, W, C_in)
    bot = (bot_ref[...] * bot_keep).astype(jnp.bfloat16)      # (1, W, C_in)
    body = body_ref[...].astype(jnp.bfloat16)                 # (TH, W, C_in)

    xb = jnp.concatenate([top, body, bot], axis=0)            # (TH+2, W, C_in)
    zcol = jnp.zeros((TH + 2, 1, C_in), jnp.bfloat16)
    xb = jnp.concatenate([zcol, xb, zcol], axis=1)            # (TH+2, W+2, C_in)

    # im2col: 9 shifted taps concatenated along channels, one reshape, then a
    # single K = 9*C_in matmul on the MXU.
    cols = [xb[ky:ky + TH, kx:kx + W, :]                      # (TH, W, C_in) each
            for ky in range(3) for kx in range(3)]
    patches = jnp.concatenate(cols, axis=-1)                  # (TH, W, 9*C_in)
    patches = patches.reshape(TH * W, 9 * C_in)               # (TH*W, 9*C_in)

    acc = jnp.dot(patches, wconv_ref[...],
                  preferred_element_type=jnp.float32)         # (TH*W, 128) f32
    feat = jnp.maximum(acc + bconv_ref[...], 0.0).astype(jnp.bfloat16)

    # Fused cls+box 1x1 heads: one K=N=128 matmul, lane-dense bf16 store.
    head = jnp.dot(feat, whead_ref[...],
                   preferred_element_type=jnp.float32) + bhead_ref[...]
    out_ref[...] = head.astype(out_ref.dtype)


def detector_forward(x_nhwc, params):
    """Forward pass of the (synthetic) Detector: RPN head on an NHWC BEV map."""
    B, H, W, C_in = x_nhwc.shape
    C_mid = params['wconv'].shape[-1]
    C_cls = params['wcls'].shape[-1]
    C_box = params['wbox'].shape[-1]
    C_head = C_cls + C_box
    C_pad = max(128, pl.cdiv(C_head, 128) * 128)     # lane-dense packed head width
    C_midp = max(128, pl.cdiv(C_mid, 128) * 128)     # MXU-width-padded hidden dim

    TH = _pick_row_block(H, W)
    nR = H // TH

    # Weight prep (tiny, one-off): im2col-flatten and N-pad the 3x3 conv,
    # fuse + zero-pad the 1x1 heads (K padded to C_midp, N padded to C_pad).
    wconv = params['wconv'].reshape(9 * C_in, C_mid)
    wconv = jnp.pad(wconv, ((0, 0), (0, C_midp - C_mid))).astype(jnp.bfloat16)
    bconv = jnp.pad(params['bconv'],
                    ((0, 0), (0, C_midp - C_mid))).astype(jnp.float32)
    whead = jnp.concatenate([params['wcls'], params['wbox']], axis=-1)
    whead = jnp.pad(whead, ((0, C_midp - C_mid),
                            (0, C_pad - C_head))).astype(jnp.bfloat16)
    bhead = jnp.concatenate([params['bcls'], params['bbox']], axis=-1)
    bhead = jnp.pad(bhead, ((0, 0), (0, C_pad - C_head))).astype(jnp.float32)

    kernel = functools.partial(_rpn_kernel, TH=TH, W=W)

    packed = pl.pallas_call(
        kernel,
        out_shape=jax.ShapeDtypeStruct((B, H * W, C_pad), jnp.bfloat16),
        grid_spec=pltpu.PrefetchScalarGridSpec(
            num_scalar_prefetch=0,
            grid=(B, nR),
            in_specs=[
                # Clamped single-row halo above / disjoint body slab / clamped
                # single-row halo below.  All auto-pipelined; VMEM use per step
                # is O(TH*W*C_in) regardless of H.
                pl.BlockSpec((None, 1, W, C_in),
                             lambda b, r: (b, jnp.maximum(r * TH - 1, 0), 0, 0)),
                pl.BlockSpec((None, TH, W, C_in),
                             lambda b, r: (b, r, 0, 0)),
                pl.BlockSpec((None, 1, W, C_in),
                             lambda b, r: (b, jnp.minimum(r * TH + TH, H - 1), 0, 0)),
                # Weights/biases: constant-index, VMEM-resident across the grid.
                pl.BlockSpec((9 * C_in, C_midp), lambda b, r: (0, 0)),
                pl.BlockSpec((1, C_midp),        lambda b, r: (0, 0)),
                pl.BlockSpec((C_midp, C_pad),    lambda b, r: (0, 0)),
                pl.BlockSpec((1, C_pad),         lambda b, r: (0, 0)),
            ],
            out_specs=pl.BlockSpec((None, TH * W, C_pad), lambda b, r: (b, r, 0)),
        ),
        compiler_params=pltpu.CompilerParams(
            dimension_semantics=("parallel", "parallel")),
    )(x_nhwc, x_nhwc, x_nhwc, wconv, bconv, whead, bhead)

    # Unpack the lane-dense slab (bf16, NHWC): slice the real channels only.
    packed = packed.reshape(B, H, W, C_pad)
    return {
        'cls_preds': packed[..., :C_cls],
        'box_preds': packed[..., C_cls:C_head],
    }


def _reference_forward(x_nhwc, params):
    """Pure-JAX reference (lax.conv) with matching bf16 rounding, NHWC."""
    f32 = jnp.float32
    x = x_nhwc.astype(jnp.bfloat16).astype(f32)
    w = params['wconv'].astype(jnp.bfloat16).astype(f32)
    dn = lax.conv_dimension_numbers(x.shape, w.shape, ('NHWC', 'HWIO', 'NHWC'))
    feat = lax.conv_general_dilated(x, w, (1, 1), 'SAME', dimension_numbers=dn,
                                    preferred_element_type=f32)
    feat = jnp.maximum(feat + params['bconv'][0], 0.0)
    featb = feat.astype(jnp.bfloat16).astype(f32)
    wcls = params['wcls'].astype(jnp.bfloat16).astype(f32)
    wbox = params['wbox'].astype(jnp.bfloat16).astype(f32)
    cls = jnp.einsum('bhwc,cd->bhwd', featb, wcls,
                     preferred_element_type=f32) + params['bcls'][0]
    box = jnp.einsum('bhwc,cd->bhwd', featb, wbox,
                     preferred_element_type=f32) + params['bbox'][0]
    return {'cls_preds': cls, 'box_preds': box}


def _init_params(key, C_in, C_mid, num_anchors=2, num_classes=1):
    C_cls = num_anchors * num_classes
    C_box = num_anchors * 7                               # xyzwlhr
    ks = jax.random.split(key, 6)
    scale = lambda fan_in: 1.0 / jnp.sqrt(fan_in)
    return {
        'wconv': jax.random.normal(ks[0], (3, 3, C_in, C_mid),
                                   jnp.float32) * scale(9 * C_in),
        'bconv': jax.random.normal(ks[1], (1, C_mid), jnp.float32) * 0.01,
        'wcls':  jax.random.normal(ks[2], (C_mid, C_cls),
                                   jnp.float32) * scale(C_mid),
        'bcls':  jax.random.normal(ks[3], (1, C_cls), jnp.float32) * 0.01,
        'wbox':  jax.random.normal(ks[4], (C_mid, C_box),
                                   jnp.float32) * scale(C_mid),
        'bbox':  jax.random.normal(ks[5], (1, C_box), jnp.float32) * 0.01,
    }


if __name__ == "__main__":
    key = jax.random.PRNGKey(0)
    k_x, k_p = jax.random.split(key)

    B, H, W, C_in = 2, 16, 16, 32                         # small BEV pseudo-image (NHWC)
    C_mid = 64
    x = jax.random.normal(k_x, (B, H, W, C_in), jnp.float32)
    params = _init_params(k_p, C_in, C_mid)

    fwd = jax.jit(detector_forward)
    out = jax.block_until_ready(fwd(x, params))
    ref = jax.block_until_ready(_reference_forward(x, params))

    assert out['cls_preds'].shape == ref['cls_preds'].shape
    assert out['box_preds'].shape == ref['box_preds'].shape
    # bf16 packed output vs f32 reference: loosened tolerance accordingly.
    assert jnp.allclose(out['cls_preds'].astype(jnp.float32),
                        ref['cls_preds'], rtol=2e-2, atol=2e-2)
    assert jnp.allclose(out['box_preds'].astype(jnp.float32),
                        ref['box_preds'], rtol=2e-2, atol=2e-2)

    print("KERNEL_OK")
</pallas_src>

<mosaic_0001>
module attributes {stable_mosaic.version = 11 : i64} {
  func.func @_rpn_kernel(%arg0: i32, %arg1: i32, %arg2: memref<1x1x16x32xf32, #tpu.memory_space<vmem>>, %arg3: memref<1x8x16x32xf32, #tpu.memory_space<vmem>>, %arg4: memref<1x1x16x32xf32, #tpu.memory_space<vmem>>, %arg5: memref<288x128xbf16, #tpu.memory_space<vmem>>, %arg6: memref<1x128xf32, #tpu.memory_space<vmem>>, %arg7: memref<128x128xbf16, #tpu.memory_space<vmem>>, %arg8: memref<1x128xf32, #tpu.memory_space<vmem>>, %arg9: memref<1x128x128xbf16, #tpu.memory_space<vmem>>) attributes {dimension_semantics = [#tpu.dimension_semantics<parallel>, #tpu.dimension_semantics<parallel>], iteration_bounds = array<i64: 2, 2>, scalar_prefetch = 0 : i64, scratch_operands = 0 : i64, tpu.core_type = #tpu.core_type<tc>, window_params = [{transform_indices = @transform_0, window_bounds = array<i64: 1, 1, 16, 32>}, {transform_indices = @transform_1, window_bounds = array<i64: 1, 8, 16, 32>}, {transform_indices = @transform_2, window_bounds = array<i64: 1, 1, 16, 32>}, {pipeline_mode = #tpu.pipeline_mode<synchronous>, transform_indices = @transform_3, window_bounds = array<i64: 288, 128>}, {pipeline_mode = #tpu.pipeline_mode<synchronous>, transform_indices = @transform_4, window_bounds = array<i64: 1, 128>}, {pipeline_mode = #tpu.pipeline_mode<synchronous>, transform_indices = @transform_5, window_bounds = array<i64: 128, 128>}, {pipeline_mode = #tpu.pipeline_mode<synchronous>, transform_indices = @transform_6, window_bounds = array<i64: 1, 128>}, {transform_indices = @transform_7, window_bounds = array<i64: 1, 128, 128>}]} {
    %c0_i32 = arith.constant 0 : i32
    %0 = arith.cmpi sgt, %arg1, %c0_i32 : i32
    %1 = arith.extui %0 : i1 to i32
    %2 = arith.sitofp %1 : i32 to f32
    %c1_i32 = arith.constant 1 : i32
    %3 = arith.cmpi slt, %arg1, %c1_i32 : i32
    %4 = arith.extui %3 : i1 to i32
    %5 = arith.sitofp %4 : i32 to f32
    %c0 = arith.constant 0 : index
    %c0_0 = arith.constant 0 : index
    %c0_1 = arith.constant 0 : index
    %c0_2 = arith.constant 0 : index
    %6 = vector.load %arg2[%c0, %c0_0, %c0_1, %c0_2] : memref<1x1x16x32xf32, #tpu.memory_space<vmem>>, vector<1x1x16x32xf32>
    %7 = vector.shape_cast %6 : vector<1x1x16x32xf32> to vector<1x16x32xf32>
    %8 = vector.broadcast %2 : f32 to vector<1x16x32xf32>
    %9 = arith.mulf %7, %8 : vector<1x16x32xf32>
    %10 = arith.truncf %9 : vector<1x16x32xf32> to vector<1x16x32xbf16>
    %c0_3 = arith.constant 0 : index
    %c0_4 = arith.constant 0 : index
    %c0_5 = arith.constant 0 : index
    %c0_6 = arith.constant 0 : index
    %11 = vector.load %arg4[%c0_3, %c0_4, %c0_5, %c0_6] : memref<1x1x16x32xf32, #tpu.memory_space<vmem>>, vector<1x1x16x32xf32>
    %12 = vector.shape_cast %11 : vector<1x1x16x32xf32> to vector<1x16x32xf32>
    %13 = vector.broadcast %5 : f32 to vector<1x16x32xf32>
    %14 = arith.mulf %12, %13 : vector<1x16x32xf32>
    %15 = arith.truncf %14 : vector<1x16x32xf32> to vector<1x16x32xbf16>
    %c0_7 = arith.constant 0 : index
    %c0_8 = arith.constant 0 : index
    %c0_9 = arith.constant 0 : index
    %c0_10 = arith.constant 0 : index
    %16 = vector.load %arg3[%c0_7, %c0_8, %c0_9, %c0_10] : memref<1x8x16x32xf32, #tpu.memory_space<vmem>>, vector<1x8x16x32xf32>
    %17 = vector.shape_cast %16 : vector<1x8x16x32xf32> to vector<8x16x32xf32>
    %18 = arith.truncf %17 : vector<8x16x32xf32> to vector<8x16x32xbf16>
    %19 = tpu.concatenate %10, %18, %15 in 0 : vector<1x16x32xbf16>, vector<8x16x32xbf16>, vector<1x16x32xbf16> -> vector<10x16x32xbf16>
    %cst = arith.constant 0.000000e+00 : bf16
    %20 = vector.broadcast %cst : bf16 to vector<10x1x32xbf16>
    %21 = tpu.concatenate %20, %19, %20 in 1 : vector<10x1x32xbf16>, vector<10x16x32xbf16>, vector<10x1x32xbf16> -> vector<10x18x32xbf16>
    %22 = vector.extract_strided_slice %21 {offsets = [0, 0, 0], sizes = [8, 16, 32], strides = [1, 1, 1]} : vector<10x18x32xbf16> to vector<8x16x32xbf16>
    %23 = vector.extract_strided_slice %21 {offsets = [0, 1, 0], sizes = [8, 16, 32], strides = [1, 1, 1]} : vector<10x18x32xbf16> to vector<8x16x32xbf16>
    %24 = vector.extract_strided_slice %21 {offsets = [0, 2, 0], sizes = [8, 16, 32], strides = [1, 1, 1]} : vector<10x18x32xbf16> to vector<8x16x32xbf16>
    %25 = vector.extract_strided_slice %21 {offsets = [1, 0, 0], sizes = [8, 16, 32], strides = [1, 1, 1]} : vector<10x18x32xbf16> to vector<8x16x32xbf16>
    %26 = vector.extract_strided_slice %21 {offsets = [1, 1, 0], sizes = [8, 16, 32], strides = [1, 1, 1]} : vector<10x18x32xbf16> to vector<8x16x32xbf16>
    %27 = vector.extract_strided_slice %21 {offsets = [1, 2, 0], sizes = [8, 16, 32], strides = [1, 1, 1]} : vector<10x18x32xbf16> to vector<8x16x32xbf16>
    %28 = vector.extract_strided_slice %21 {offsets = [2, 0, 0], sizes = [8, 16, 32], strides = [1, 1, 1]} : vector<10x18x32xbf16> to vector<8x16x32xbf16>
    %29 = vector.extract_strided_slice %21 {offsets = [2, 1, 0], sizes = [8, 16, 32], strides = [1, 1, 1]} : vector<10x18x32xbf16> to vector<8x16x32xbf16>
    %30 = vector.extract_strided_slice %21 {offsets = [2, 2, 0], sizes = [8, 16, 32], strides = [1, 1, 1]} : vector<10x18x32xbf16> to vector<8x16x32xbf16>
    %31 = tpu.concatenate %22, %23, %24, %25, %26, %27, %28, %29, %30 in 2 : vector<8x16x32xbf16>, vector<8x16x32xbf16>, vector<8x16x32xbf16>, vector<8x16x32xbf16>, vector<8x16x32xbf16>, vector<8x16x32xbf16>, vector<8x16x32xbf16>, vector<8x16x32xbf16>, vector<8x16x32xbf16> -> vector<8x16x288xbf16>
    %32 = vector.shape_cast %31 : vector<8x16x288xbf16> to vector<128x288xbf16>
    %c0_11 = arith.constant 0 : index
    %c0_12 = arith.constant 0 : index
    %33 = vector.load %arg5[%c0_11, %c0_12] : memref<288x128xbf16, #tpu.memory_space<vmem>>, vector<288x128xbf16>
    %cst_13 = arith.constant dense<0.000000e+00> : vector<128x128xf32>
    %34 = tpu.matmul %32, %33, %cst_13 {dimension_numbers = #tpu.dot_dimension_numbers<[1], [0], [0], [1], [0, 0, 1, 1], [], []>} : vector<128x288xbf16>, vector<288x128xbf16>, vector<128x128xf32> -> vector<128x128xf32>
    %c0_14 = arith.constant 0 : index
    %c0_15 = arith.constant 0 : index
    %35 = vector.load %arg6[%c0_14, %c0_15] : memref<1x128xf32, #tpu.memory_space<vmem>>, vector<1x128xf32>
    %36 = vector.broadcast %35 : vector<1x128xf32> to vector<128x128xf32>
    %37 = arith.addf %34, %36 : vector<128x128xf32>
    %cst_16 = arith.constant 0.000000e+00 : f32
    %38 = vector.broadcast %cst_16 : f32 to vector<128x128xf32>
    %39 = arith.maximumf %37, %38 : vector<128x128xf32>
    %40 = arith.truncf %39 : vector<128x128xf32> to vector<128x128xbf16>
    %c0_17 = arith.constant 0 : index
    %c0_18 = arith.constant 0 : index
    %41 = vector.load %arg7[%c0_17, %c0_18] : memref<128x128xbf16, #tpu.memory_space<vmem>>, vector<128x128xbf16>
    %cst_19 = arith.constant dense<0.000000e+00> : vector<128x128xf32>
    %42 = tpu.matmul %40, %41, %cst_19 {dimension_numbers = #tpu.dot_dimension_numbers<[1], [0], [0], [1], [0, 0, 1, 1], [], []>} : vector<128x128xbf16>, vector<128x128xbf16>, vector<128x128xf32> -> vector<128x128xf32>
    %c0_20 = arith.constant 0 : index
    %c0_21 = arith.constant 0 : index
    %43 = vector.load %arg8[%c0_20, %c0_21] : memref<1x128xf32, #tpu.memory_space<vmem>>, vector<1x128xf32>
    %44 = vector.broadcast %43 : vector<1x128xf32> to vector<128x128xf32>
    %45 = arith.addf %42, %44 : vector<128x128xf32>
    %46 = arith.truncf %45 : vector<128x128xf32> to vector<128x128xbf16>
    %c0_22 = arith.constant 0 : index
    %c0_23 = arith.constant 0 : index
    %c0_24 = arith.constant 0 : index
    %47 = vector.load %arg9[%c0_22, %c0_23, %c0_24] : memref<1x128x128xbf16, #tpu.memory_space<vmem>>, vector<1x128x128xbf16>
    %48 = vector.shape_cast %47 : vector<1x128x128xbf16> to vector<128x128xbf16>
    %49 = vector.shape_cast %46 : vector<128x128xbf16> to vector<1x128x128xbf16>
    tpu.vector_store %arg9[%c0_22, %c0_23, %c0_24], %49 {strides = array<i32>} : memref<1x128x128xbf16, #tpu.memory_space<vmem>>, vector<1x128x128xbf16>,
    return
  }
  func.func @transform_0(%arg0: i32, %arg1: i32) -> (i32, i32, i32, i32) {
    %c8_i32 = arith.constant 8 : i32
    %0 = arith.muli %arg1, %c8_i32 : i32
    %c1_i32 = arith.constant 1 : i32
    %1 = arith.subi %0, %c1_i32 : i32
    %c0_i32 = arith.constant 0 : i32
    %2 = arith.maxsi %1, %c0_i32 : i32
    %c0_i32_0 = arith.constant 0 : i32
    %c0_i32_1 = arith.constant 0 : i32
    %c0_i32_2 = arith.constant 0 : i32
    return %arg0, %2, %c0_i32_0, %c0_i32_1 : i32, i32, i32, i32
  }
  func.func @transform_1(%arg0: i32, %arg1: i32) -> (i32, i32, i32, i32) {
    %c0_i32 = arith.constant 0 : i32
    %c0_i32_0 = arith.constant 0 : i32
    %c0_i32_1 = arith.constant 0 : i32
    return %arg0, %arg1, %c0_i32, %c0_i32_0 : i32, i32, i32, i32
  }
  func.func @transform_2(%arg0: i32, %arg1: i32) -> (i32, i32, i32, i32) {
    %c8_i32 = arith.constant 8 : i32
    %0 = arith.muli %arg1, %c8_i32 : i32
    %c8_i32_0 = arith.constant 8 : i32
    %1 = arith.addi %0, %c8_i32_0 : i32
    %c15_i32 = arith.constant 15 : i32
    %2 = arith.minsi %1, %c15_i32 : i32
    %c0_i32 = arith.constant 0 : i32
    %c0_i32_1 = arith.constant 0 : i32
    %c0_i32_2 = arith.constant 0 : i32
    return %arg0, %2, %c0_i32, %c0_i32_1 : i32, i32, i32, i32
  }
  func.func @transform_3(%arg0: i32, %arg1: i32) -> (i32, i32) {
    %c0_i32 = arith.constant 0 : i32
    %c0_i32_0 = arith.constant 0 : i32
    %c0_i32_1 = arith.constant 0 : i32
    return %c0_i32, %c0_i32_0 : i32, i32
  }
  func.func @transform_4(%arg0: i32, %arg1: i32) -> (i32, i32) {
    %c0_i32 = arith.constant 0 : i32
    %c0_i32_0 = arith.constant 0 : i32
    %c0_i32_1 = arith.constant 0 : i32
    return %c0_i32, %c0_i32_0 : i32, i32
  }
  func.func @transform_5(%arg0: i32, %arg1: i32) -> (i32, i32) {
    %c0_i32 = arith.constant 0 : i32
    %c0_i32_0 = arith.constant 0 : i32
    %c0_i32_1 = arith.constant 0 : i32
    return %c0_i32, %c0_i32_0 : i32, i32
  }
  func.func @transform_6(%arg0: i32, %arg1: i32) -> (i32, i32) {
    %c0_i32 = arith.constant 0 : i32
    %c0_i32_0 = arith.constant 0 : i32
    %c0_i32_1 = arith.constant 0 : i32
    return %c0_i32, %c0_i32_0 : i32, i32
  }
  func.func @transform_7(%arg0: i32, %arg1: i32) -> (i32, i32, i32) {
    %c0_i32 = arith.constant 0 : i32
    %c0_i32_0 = arith.constant 0 : i32
    return %arg0, %arg1, %c0_i32 : i32, i32, i32
  }
}

</mosaic_0001>

<bundles_post_ra>
// kernel: detector_forward.1
= control target key start
LH: loop header
LB: loop body
LE: loop exit
PB: predicated region body
PF: predicated region fallthrough
CT: control target
= control target key end

     0   :  { %s2216_s24 = smov 0   ;;  %s2218_s25 = smov 0   ;;  %s2805_s0 = inlined_call_operand.vmem [shape: f32[2,16,16,32], index: 0, kind: input, shape index: {}, may-alias: {0,1,2}]   ;;  %s2806_s1 = inlined_call_operand.vmem [shape: f32[2,16,16,32], index: 1, kind: input, shape index: {}, may-alias: {0,1,2}]   ;;  %s2807_s2 = inlined_call_operand.vmem [shape: f32[2,16,16,32], index: 2, kind: input, shape index: {}, may-alias: {0,1,2}]   ;;  %s2808_s3 = inlined_call_operand.vmem [shape: bf16[288,128], index: 3, kind: input, shape index: {}]   ;;  %s2809_s4 = inlined_call_operand.vmem [shape: f32[1,128], index: 4, kind: input, shape index: {}]   ;;  %s2810_s5 = inlined_call_operand.vmem [shape: bf16[128,128], index: 5, kind: input, shape index: {}]   ;;  %s2811_s6 = inlined_call_operand.vmem [shape: f32[1,128], index: 6, kind: input, shape index: {}]   ;;  %s2812_s7 = inlined_call_operand.vmem [shape: bf16[2,256,128], index: 7, kind: output, shape index: {}]  }
   0x1   :  { %s2220_s26 = smov 0   ;;  %s2222_s27 = smov 0  }
   0x2   :  { %s2224_s28 = smov 0  }
   0x3 LB: > { %s26_s29 = sadd.s32 1, %s2163_s26  ;;  %s29_s30 = sadd.s32 1, %s2167_s27  ;;  %s2171_s28 = sphi %s2224_s28, %s17_s28   ;;  %s2167_s27 = sphi %s2222_s27, %s2819_s27   ;;  %s2163_s26 = sphi %s2220_s26, %s2818_s26   ;;  %s2159_s25 = sphi %s2218_s25, %s2817_s25   ;;  %s2155_s24 = sphi %s2216_s24, %s2816_s24  }
   0x4   : > { %p27_p0 = scmp.ge.s32.totalorder %s26_s29, 2  ;;  %p1778_p1 = scmp.ge.s32.totalorder %s2171_s28, 1 }
   0x5   : > { %p323_p2 = scmp.lt.s32.totalorder %s2171_s28, 5 }
   0x6   : > { %s2821_s29 = smov (%p27_p0, %s26_s29), 0  ;;  %s2823_s30 = smov (!%p27_p0, %s29_s30), %s2167_s27 }
   0x7   : > { %p324_p3 = pnand %p1778_p1, %p323_p2  ;;  %p31_p4 = scmp.ge.s32.totalorder %s2823_s30, 2 }
   0x8   : > { %s2249_s8 = sshll.u32 (!%p324_p3), %s2155_s24, 3  ;;  %p394_p5 = scmp.lt.s32.totalorder (!%p324_p3), %s2159_s25, 1  ;;  %v2107_v0 = vld [vmem:[%s2808_s3 + $0x40] sm:$0xff] (!%p324_p3)   ;;  %v2109_v2 = vld [vmem:[%s2808_s3 + $0x48] sm:$0xff] (!%p324_p3)   ;;  %vm578_vm0 = vcmask (!%p324_p3), 1040384   ;;  %v2111_v30 = vld [vmem:[%s2808_s3 + $0x50] sm:$0xff] (!%p324_p3)  }
   0x9   : > { %s2825_s30 = smov (%p31_p4, %s2823_s30), 0  ;;  %327 = sbr.rel (%p324_p3) target bundleno = 687 (0x2af), region = 48 }
   0xa   : > { %p410_p6 = scmp.lt.s32.totalorder (!%p324_p3), %s2249_s8, 15  ;;  %1922 = vmatprep.subr.bf16.mxu0 (!%p324_p3), %v2107_v0  ;;  %v2108_v1 = vld [vmem:[%s2808_s3] sm:$0xff] (!%p324_p3)   ;;  %s1780_s17 = sadd.s32 (!%p324_p3), 4294967295, %s2249_s8  ;;  %vm579_vm1 = vsmask.f32 (!%p324_p3), 256  ;;  %v2110_v27 = vld [vmem:[%s2808_s3 + $0x8] sm:$0xff] (!%p324_p3)  }
   0xb   : > { %p392_p7 = scmp.gt.s32.totalorder (!%p324_p3), %s1780_s17, 0  ;;  %1923 = vmatpush3.bf16.msra.mxu0 (!%p324_p3), %v2108_v1  ;;  %p1781_p8 = scmp.lt.s32.totalorder (!%p324_p3), %s1780_s17, 15  ;;  %vm2285_vm2 = vmand (!%p324_p3), %vm578_vm0, %vm579_vm1  ;;  %v2112_v33 = vld [vmem:[%s2808_s3 + $0x10] sm:$0xff] (!%p324_p3)   ;;  %v2113_v37 = vld [vmem:[%s2808_s3 + $0x58] sm:$0xff] (!%p324_p3)   ;;  %vm730_vm3 = vcmask (!%p324_p3), 1046528   ;;  %vm869_vm5 = vcmask (!%p324_p3), 261120  }
   0xc   : > { %1924 = vmatprep.subr.bf16.mxu0 (!%p324_p3), %v2109_v2  ;;  %p446_p9 = scmp.gt.s32.totalorder (!%p324_p3), %s2155_s24, 0  ;;  %s2173_s14 = smov (!%p324_p3), 64   ;;  %v2114_v47 = vld [vmem:[%s2808_s3 + $0x18] sm:$0xff] (!%p324_p3)   ;;  %vm601_vm4 = vsmask.f32 (!%p324_p3), 7424  ;;  %v2115_v50 = vld [vmem:[%s2808_s3 + $0x60] sm:$0xff] (!%p324_p3)  }
   0xd   : > { %p449_p11 = scmp.lt.s32.totalorder (!%p324_p3), %s2155_s24, 1  ;;  %v2116_v63 = vld [vmem:[%s2808_s3 + $0x20] sm:$0xff] (!%p324_p3)   ;;  %v2117_v1 = vld [vmem:[%s2808_s3 + $0x68] sm:$0xff] (!%p324_p3)   ;;  %vm886_vm6 = vcmask (!%p324_p3), 523264   ;;  %vm903_vm7 = vcmask (!%p324_p3), 785408  }
   0xf   : > { %1925 = vmatpush3.bf16.msra.mxu0 (!%p324_p3), %v2110_v27 }
  0x10   : > { %s2827_s25 = smov (!%p394_p5, %s2159_s25), 1  ;;  %1926 = vmatprep.subr.bf16.mxu0 %v2111_v30 }
  0x11   : > { %s411_s11 = scalar_select %p410_p6, %s2249_s8, 15 }
  0x12   : > { %s2256_s12 = sshll.u32 %s2827_s25, 5 }
  0x13   : > { %s1790_s13 = sshll.u32 %s411_s11, 1  ;;  %1927 = vmatpush3.bf16.msra.mxu0 %v2112_v33 }
  0x14   : > { %s414_s16 = sadd.s32 %s1790_s13, %s2256_s12  ;;  %1928 = vmatprep.subr.bf16.mxu0 %v2113_v37 }
  0x15   : > { %s1792_s20 = sshll.u32 %s414_s16, 3  ;;  %s419_s16 = sadd.s32 8, %s2249_s8 }
  0x16   : > { %s2269_s23 = scalar_lea.vmem %s2806_s1, %s1792_s20  ;;  %p2323_p10 = scmp.lt.s32.totalorder %s419_s16, 15 }
  0x17   : > { %v468_v3 = vld [vmem:[%s2269_s23 + $0x20] sm:$0xff]  ;;  %v469_v4 = vld [vmem:[%s2269_s23 + $0x28] sm:$0xff]  ;;  %v466_v5 = vld [vmem:[%s2269_s23 + $0x10] sm:$0xff]  ;;  %s393_s25 = scalar_select %p392_p7, %s1780_s17, 0  ;;  %1929 = vmatpush3.bf16.msra.mxu0 %v2114_v47 }
  0x18   : > { %v482_v6 = vpack.c.bf16 %v469_v4, %v468_v3  ;;  %v467_v7 = vld [vmem:[%s2269_s23 + $0x18] sm:$0xff]  ;;  %v470_v8 = vld [vmem:[%s2269_s23 + $0x30] sm:$0xff]  ;;  %v464_v12 = vld [vmem:[%s2269_s23] sm:$0xff]  ;;  %s2281_s9 = scalar_select %p446_p9, 1, 0  ;;  %1930 = vmatprep.subr.bf16.mxu0 %v2115_v50 }
  0x19   : > { %v471_v9 = vld [vmem:[%s2269_s23 + $0x38] sm:$0xff]  ;;  %v481_v10 = vpack.c.bf16 %v467_v7, %v466_v5  ;;  %v465_v13 = vld [vmem:[%s2269_s23 + $0x8] sm:$0xff]  ;;  %s2829_s25 = smov (!%p1781_p8, %s393_s25), 15  ;;  %v472_v53 = vld [vmem:[%s2269_s23 + $0x40] sm:$0xff]  ;;  %s2831_s16 = smov (!%p2323_p10, %s419_s16), 15 }
  0x1a   : > { %v483_v11 = vpack.c.bf16 %v471_v9, %v470_v8  ;;  %v510_v14 = vshrl.u32 %v482_v6, 16  ;;  %v513_v15 = vshll.u32 %v482_v6, 16  ;;  %v480_v16 = vpack.c.bf16 %v465_v13, %v464_v12  ;;  %s1786_s10 = sshll.u32 %s2829_s25, 1  ;;  %s448_s19 = scvt.s32.f32 %s2281_s9  ;;  %v473_v58 = vld [vmem:[%s2269_s23 + $0x48] sm:$0xff]  ;;  %v474_v6 = vld [vmem:[%s2269_s23 + $0x50] sm:$0xff]  ;;  %v475_v7 = vld [vmem:[%s2269_s23 + $0x58] sm:$0xff] }
  0x1b   : > { %v503_v17 = vshrl.u32 %v481_v10, 16  ;;  %v506_v18 = vshll.u32 %v481_v10, 16  ;;  %s400_s11 = sadd.s32 %s2256_s12, %s1786_s10  ;;  %v2386_v5 = vpack.c.bf16 %v473_v58, %v472_v53  ;;  %s2833_s16 = smov (!%p2323_p10, %s2831_s16), 15  ;;  %1931 = vmatpush3.bf16.msra.mxu0 %v2116_v63  ;;  %v2414_v27 = vpack.c.bf16 %v475_v7, %v474_v6  ;;  %v2123_v53 = vld [vmem:[%s2808_s3 + $0x38] sm:$0xff]  }
  0x1c   : > { %v517_v19 = vshrl.u32 %v483_v11, 16  ;;  %v520_v20 = vshll.u32 %v483_v11, 16  ;;  %v512_v21 = vrot.slane %v510_v14, 7  ;;  %v496_v22 = vshrl.u32 %v480_v16, 16  ;;  %s1788_s13 = sshll.u32 %s400_s11, 3  ;;  %s2175_s11 = smov 32   ;;  %1932 = vmatprep.subr.bf16.mxu0 %v2117_v1 }
  0x1d   : > { %v499_v23 = vshll.u32 %v480_v16, 16  ;;  %v505_v25 = vrot.slane %v503_v17, 7  ;;  %s402_s10 = scalar_lea.vmem %s2805_s0, %s1788_s13  ;;  %v454_v46 = vstv %s448_s19  ;;  %s2174_s19 = smov 96   ;;  %v2118_v16 = vld [vmem:[%s2808_s3 + $0x28] sm:$0xff]   ;;  %v2119_v17 = vld [vmem:[%s2808_s3 + $0x70] sm:$0xff]   ;;  %v479_v1 = vld [vmem:[%s2269_s23 + $0x78] sm:$0xff] }
  0x1e   : > { %v2289_v26 = vrot.slane %v517_v19, 7  ;;  %v515_v28 = vor.u32 %v513_v15, %v512_v21  ;;  %v498_v29 = vrot.slane %v496_v22, 7  ;;  %v452_v45 = vld [vmem:[%s402_s10] sm:$0xff]  ;;  %v2348_v48 = vsel %vm2285_vm2, %v512_v21, 0  ;;  %v453_v49 = vld [vmem:[%s402_s10 + $0x8] sm:$0xff]  ;;  %s2416_s15 = sshll.u32 %s2833_s16, 1 }
  0x1f   : > { %v508_v31 = vor.u32 %v506_v18, %v505_v25  ;;  %v2339_v42 = vsel %vm2285_vm2, %v505_v25, 0  ;;  %v455_v57 = vmul.f32 %v454_v46, %v452_v45  ;;  %v741_v59 = vrot.slane %v2348_v48, 1  ;;  %s2378_s8 = scalar_select %p449_p11, 1, 0  ;;  %1933 = vmatpush3.bf16.msra.mxu0 %v2118_v16 }
  0x20   : > { %v522_v32 = vor.u32 %v520_v20, %v2289_v26  ;;  %v2305_v34 = vsel %vm2285_vm2, 0, %v515_v28  ;;  %v501_v35 = vor.u32 %v499_v23, %v498_v29  ;;  %v592_v36 = vsel %vm2285_vm2, %v498_v29, 0  ;;  %1934 = vmatprep.subr.bf16.mxu0 %v2119_v17  ;;  %s428_s9 = sadd.s32 %s2416_s15, %s2256_s12  ;;  %s1800_s10 = sshll.u32 %s2155_s24, 4 }
  0x21   : > { %823 = vrot.lane.b32.xlu0 %v2305_v34, %s2173_s14  ;;  %v2319_v38 = vsel %vm2285_vm2, 0, %v508_v31  ;;  %v735_v41 = vrot.slane %v592_v36, 1  ;;  %v738_v52 = vrot.slane %v2339_v42, 1  ;;  %v622_v55 = vshll.u32 %v592_v36, 16  ;;  %v2121_v36 = vld [vmem:[%s2808_s3 + $0x78] sm:$0xff]   ;;  %s1799_s18 = sshll.u32 %s428_s9, 3  ;;  %s451_s25 = scvt.s32.f32 %s2378_s8 }
  0x22   : > { %821 = vrot.lane.b32.xlu1 %v2319_v38, %s2173_s14  ;;  %v2331_v39 = vsel %vm2285_vm2, 0, %v522_v32  ;;  %v2335_v40 = vsel %vm2285_vm2, 0, %v501_v35  ;;  %v737_v51 = vrot.slane %v2319_v38, 1  ;;  %v629_v56 = vshll.u32 %v2319_v38, 16  ;;  %v2120_v32 = vld [vmem:[%s2808_s3 + $0x30] sm:$0xff]   ;;  %s430_s22 = scalar_lea.vmem %s2807_s2, %s1799_s18  ;;  %p438_p12 = scmp.lt.s32.totalorder %s1800_s10, 31 }
  0x23   : > { %v734_v43 = vrot.slane %v2335_v40, 1  ;;  %v617_v44 = vshll.u32 %v2335_v40, 16  ;;  %v615_v60 = vshrl.u32 %v2335_v40, 16  ;;  %v456_v62 = vmul.f32 %v454_v46, %v453_v49  ;;  %v477_v49 = vld [vmem:[%s2269_s23 + $0x68] sm:$0xff]  ;;  %1935 = vmatpush3.bf16.msra.mxu0 %v2120_v32 }
  0x24   : > { %v740_v0 = vrot.slane %v2305_v34, 1  ;;  %v627_v2 = vshrl.u32 %v2319_v38, 16  ;;  %v641_v3 = vshll.u32 %v2305_v34, 16  ;;  %v2393_v8 = vsel %vm730_vm3, %v737_v51, %v738_v52  ;;  %1936 = vmatprep.subr.bf16.mxu0 %v2121_v36  ;;  %s2835_s10 = smov (!%p438_p12, %s1800_s10), 31 }
  0x25   : > { %825 = vrot.lane.b32.xlu0 %v2331_v39, %s2173_s14  ;;  %v736_v54 = vsel %vm730_vm3, %v734_v43, %v735_v41  ;;  %v619_v61 = vrot.slane %v617_v44, 1  ;;  %v457_v4 = vpack.c.bf16 %v456_v62, %v455_v57  ;;  %v624_v9 = vrot.slane %v622_v55, 1  ;;  %v476_v44 = vld [vmem:[%s2269_s23 + $0x60] sm:$0xff]  ;;  %v2124_v55 = vld [vmem:[%s2808_s3 + $0x88] sm:$0xff]   ;;  %2016 = vmatprep.mubr.msk.bf16.mxu1 %vm869_vm5, %v2393_v8  ;;  %s441_s9 = sadd.s32 %s2256_s12, %s2835_s10 }
  0x26   : > { %772 = vrot.lane.b32.xlu1 %v2335_v40, %s2174_s19  ;;  %v631_v10 = vrot.slane %v629_v56, 1  ;;  %v634_v11 = vshll.u32 %v2339_v42, 16  ;;  %v646_v13 = vshll.u32 %v2348_v48, 16  ;;  %v639_v18 = vshrl.u32 %v2305_v34, 16 }
  0x27   : > { %v620_v12 = vor.u32 %v619_v61, %v615_v60  ;;  %v489_v14 = vshrl.u32 %v457_v4, 16  ;;  %v492_v15 = vshll.u32 %v457_v4, 16  ;;  %v643_v19 = vrot.slane %v641_v3, 1  ;;  %1937 = vmatpush3.bf16.msra.mxu0 %v2123_v53 }
  0x28   : > { %v524_v21 = vshrl.u32 %v2386_v5, 16  ;;  %v2412_v22 = vsel %vm730_vm3, %v740_v0, %v741_v59  ;;  %v632_v23 = vor.u32 %v631_v10, %v627_v2  ;;  %v636_v25 = vrot.slane %v634_v11, 1  ;;  %v478_v0 = vld [vmem:[%s2269_s23 + $0x70] sm:$0xff] }
  0x29   : > { %804 = vrot.lane.b32.xlu0 %v736_v54, %s2175_s11  ;;  %v491_v20 = vrot.slane %v489_v14, 7  ;;  %v2419_v28 = vsel %vm601_vm4, %v620_v12, %v624_v9  ;;  %v648_v29 = vrot.slane %v646_v13, 1  ;;  %v2424_v31 = vsel %vm2285_vm2, %v2289_v26, 0  ;;  %v2122_v26 = vld [vmem:[%s2808_s3 + $0x80] sm:$0xff]  }
  0x2a   : > { %774 = vrot.lane.b32.xlu1 %v2319_v38, %s2174_s19  ;;  %v653_v35 = vshll.u32 %v2331_v39, 16  ;;  %v644_v37 = vor.u32 %v643_v19, %v639_v18  ;;  %v526_v42 = vrot.slane %v524_v21, 7  ;;  %v527_v43 = vshll.u32 %v2386_v5, 16  ;;  %2012 = vmatprep.subr.bf16.mxu1 %v2122_v26  ;;  %v458_v14 = vld [vmem:[%s430_s22] sm:$0xff] }
  0x2b   : > { %v494_v30 = vor.u32 %v492_v15, %v491_v20  ;;  %v591_v33 = vsel %vm2285_vm2, %v491_v20, 0  ;;  %v2451_v45 = vsel %vm601_vm4, %v632_v23, %v636_v25  ;;  %v531_v52 = vshrl.u32 %v2414_v27, 16  ;;  %2013 = vmatpush3.bf16.msra.mxu1 %v2122_v26  ;;  %v459_v15 = vld [vmem:[%s430_s22 + $0x8] sm:$0xff] }
  0x2c   : > { %v610_v48 = vshll.u32 %v591_v33, 16  ;;  %v732_v51 = vrot.slane %v591_v33, 1  ;;  %v651_v56 = vshrl.u32 %v2331_v39, 16  ;;  %v658_v57 = vshll.u32 %v2424_v31, 16  ;;  %2014 = vmatprep.subr.bf16.mxu1 %v2124_v55 }
  0x2d   : > { %806 = vrot.lane.b32.xlu0 %v2393_v8, %s2175_s11  ;;  %v2442_v41 = vsel %vm2285_vm2, 0, %v494_v30  ;;  %v529_v58 = vor.u32 %v527_v43, %v526_v42  ;;  %v2468_v59 = vpack.c.bf16 %v477_v49, %v476_v44  ;;  %v2473_v60 = vsel %vm601_vm4, %v644_v37, %v648_v29 }
  0x2e   : > { %757 = vrot.lane.b32.xlu1 %v736_v54, %s2173_s14  ;;  %v603_v46 = vshrl.u32 %v2442_v41, 16  ;;  %v605_v47 = vshll.u32 %v2442_v41, 16  ;;  %v731_v50 = vrot.slane %v2442_v41, 1  ;;  %v612_v62 = vrot.slane %v610_v48, 1 }
  0x2f   : > { %v655_v63 = vrot.slane %v653_v35, 1  ;;  %v533_v3 = vrot.slane %v531_v52, 7  ;;  %v534_v4 = vshll.u32 %v2414_v27, 16  ;;  %2015 = vmatpush3.bf16.msra.mxu1 %v2124_v55  ;;  %v743_v5 = vrot.slane %v2331_v39, 1 }
  0x30   : > { %v607_v54 = vrot.slane %v605_v47, 1  ;;  %v733_v2 = vsel %vm730_vm3, %v731_v50, %v732_v51  ;;  %v744_v6 = vrot.slane %v2424_v31, 1  ;;  %v2489_v7 = vsel %vm2285_vm2, 0, %v529_v58 }
  0x31   : > { %808 = vrot.lane.b32.xlu0 %v2412_v22, %s2175_s11  ;;  %v487_v9 = vpack.c.bf16 %v479_v1, %v478_v0  ;;  %v656_v11 = vor.u32 %v655_v63, %v651_v56  ;;  %v660_v12 = vrot.slane %v658_v57, 1  ;;  %v538_v13 = vshrl.u32 %v2468_v59, 16 }
  0x32   : > { %700 = vrot.lane.b32.xlu1 %v2419_v28, %s2175_s11  ;;  %v608_v61 = vor.u32 %v607_v54, %v603_v46  ;;  %v596_v16 = vsel %vm2285_vm2, %v526_v42, 0  ;;  %v536_v17 = vor.u32 %v534_v4, %v533_v3  ;;  %v665_v18 = vshll.u32 %v2489_v7, 16  ;;  %2017 = vmatmul.mubr.msk.bf16.vlgmr.msra.gmra.mrb[0].mxu1 %vm869_vm5, %v2412_v22 }
  0x33   : > { %v460_v19 = vstv %s451_s25  ;;  %v545_v20 = vshrl.u32 %v487_v9, 16  ;;  %v2503_v25 = vsel %vm601_vm4, %v656_v11, %v660_v12  ;;  %v2506_v27 = vsel %vm730_vm3, %v743_v5, %v744_v6 }
  0x34   : > { %v613_v10 = vsel %vm601_vm4, %v608_v61, %v612_v62  ;;  %v461_v21 = vmul.f32 %v460_v19, %v458_v14  ;;  %v462_v23 = vmul.f32 %v460_v19, %v459_v15  ;;  %v540_v29 = vrot.slane %v538_v13, 7  ;;  %2020 = vmatprep.mubr.msk.bf16.mxu1 %vm869_vm5, %v2506_v27 }
  0x35   : > { %849 = vrot.lane.b32.xlu0 %v2451_v45, %s2174_s19  ;;  %v541_v30 = vshll.u32 %v2468_v59, 16  ;;  %v670_v31 = vshll.u32 %v596_v16, 16  ;;  %v747_v32 = vrot.slane %v596_v16, 1  ;;  %v2513_v33 = vsel %vm2285_vm2, 0, %v536_v17 }
  0x36   : > { %702 = vrot.lane.b32.xlu1 %v2451_v45, %s2175_s11  ;;  %v463_v35 = vpack.c.bf16 %v462_v23, %v461_v21  ;;  %v667_v36 = vrot.slane %v665_v18, 1  ;;  %v746_v26 = vrot.slane %v2489_v7, 1  ;;  %v597_v37 = vsel %vm2285_vm2, %v533_v3, 0 }
  0x37   : > { %v547_v42 = vrot.slane %v545_v20, 7  ;;  %v548_v43 = vshll.u32 %v487_v9, 16  ;;  %v749_v47 = vrot.slane %v2513_v33, 1  ;;  %v750_v48 = vrot.slane %v597_v37, 1 }
  0x38   : > { %v552_v44 = vshrl.u32 %v463_v35, 16  ;;  %v555_v46 = vshll.u32 %v463_v35, 16  ;;  %v672_v50 = vrot.slane %v670_v31, 1  ;;  %v748_v51 = vsel %vm730_vm3, %v746_v26, %v747_v32 }
  0x39   : > { %851 = vrot.lane.b32.xlu0 %v2473_v60, %s2174_s19  ;;  %v543_v52 = vor.u32 %v541_v30, %v540_v29  ;;  %v550_v54 = vor.u32 %v548_v43, %v547_v42  ;;  %v2536_v57 = vsel %vm730_vm3, %v749_v47, %v750_v48  ;;  %v677_v59 = vshll.u32 %v2513_v33, 16  ;;  %v2125_v48 = vld [vmem:[%s2810_s5] sm:$0xff]  }
  0x3a   : > { %755 = vrot.lane.b32.xlu1 %v733_v2, %s2173_s14  ;;  %v554_v49 = vrot.slane %v552_v44, 7  ;;  %2021 = vmatmul.mubr.msk.bf16.gmra.mrb[4].mxu1 %vm869_vm5, %v748_v51  ;;  %v598_v61 = vsel %vm2285_vm2, %v540_v29, 0  ;;  %v599_v6 = vsel %vm2285_vm2, %v547_v42, 0  ;;  %v675_v14 = vshrl.u32 %v2513_v33, 16 }
  0x3b   : > { %2024 = vmatprep.mubr.msk.bf16.mxu1 %vm869_vm5, %v2536_v57  ;;  %v2551_v63 = vsel %vm2285_vm2, 0, %v543_v52  ;;  %v753_v0 = vrot.slane %v598_v61, 1  ;;  %v2563_v5 = vsel %vm2285_vm2, 0, %v550_v54  ;;  %v679_v24 = vrot.slane %v677_v59, 1  ;;  %2032 = vmatprep.subr.bf16.mxu1 %v2125_v48 }
  0x3c   : > { %v557_v55 = vor.u32 %v555_v46, %v554_v49  ;;  %v2531_v56 = vsel %vm2285_vm2, %v554_v49, 0  ;;  %v752_v4 = vrot.slane %v2551_v63, 1  ;;  %v801_v9 = vrot.slane %v2563_v5, 1  ;;  %v2126_v49 = vld [vmem:[%s2810_s5 + $0x8] sm:$0xff]   ;;  %2033 = vmatpush3.bf16.msra.mxu1 %v2125_v48 }
  0x3d   : > { %698 = vrot.lane.b32.xlu0 %v613_v10, %s2175_s11  ;;  %v845_v58 = vshll.u32 %v2531_v56, 16  ;;  %v802_v10 = vrot.slane %v599_v6, 1  ;;  %v682_v16 = vshll.u32 %v597_v37, 16  ;;  %v680_v18 = vor.u32 %v679_v24, %v675_v14  ;;  %2034 = vmatprep.subr.bf16.mxu1 %v2126_v49 }
  0x3e   : > { %759 = vrot.lane.b32.xlu1 %v2393_v8, %s2173_s14  ;;  %v663_v8 = vshrl.u32 %v2489_v7, 16  ;;  %v2545_v62 = vsel %vm2285_vm2, 0, %v557_v55  ;;  %v754_v15 = vsel %vm730_vm3, %v752_v4, %v753_v0  ;;  %v689_v21 = vshll.u32 %v2551_v63, 16 }
  0x3f   : > { %v838_v1 = vshrl.u32 %v2545_v62, 16  ;;  %v840_v2 = vshll.u32 %v2545_v62, 16  ;;  %v847_v12 = vrot.slane %v845_v58, 1  ;;  %v684_v19 = vrot.slane %v682_v16, 1 }
  0x40   : > { %v668_v53 = vor.u32 %v667_v36, %v663_v8  ;;  %v687_v23 = vshrl.u32 %v2551_v63, 16  ;;  %v691_v29 = vrot.slane %v689_v21, 1  ;;  %v694_v30 = vshll.u32 %v598_v61, 16  ;;  %2035 = vmatpush3.bf16.msra.mxu1 %v2126_v49 }
  0x41   : > { %853 = vrot.lane.b32.xlu0 %v2503_v25, %s2174_s19  ;;  %v842_v11 = vrot.slane %v840_v2, 1  ;;  %v2588_v20 = vsel %vm601_vm4, %v680_v18, %v684_v19  ;;  %v791_v35 = vshll.u32 %v2563_v5, 16  ;;  %v789_v8 = vshrl.u32 %v2563_v5, 16 }
  0x42   : > { %776 = vrot.lane.b32.xlu1 %v2305_v34, %s2174_s19  ;;  %v2558_v3 = vsel %vm601_vm4, %v668_v53, %v672_v50  ;;  %2025 = vmatmul.mubr.msk.bf16.gmra.mrb[8].mxu1 %vm869_vm5, %v754_v15  ;;  %v696_v31 = vrot.slane %v694_v30, 1  ;;  %v796_v26 = vshll.u32 %v599_v6, 16  ;;  %v866_v37 = vrot.slane %v2545_v62, 1  ;;  %v2127_v50 = vld [vmem:[%s2810_s5 + $0x10] sm:$0xff]  }
  0x43   : > { %v843_v13 = vor.u32 %v842_v11, %v838_v1  ;;  %v793_v36 = vrot.slane %v791_v35, 1  ;;  %v867_v42 = vrot.slane %v2531_v56, 1  ;;  %2036 = vmatprep.subr.bf16.mxu1 %v2127_v50 }
  0x44   : > { %v798_v44 = vrot.slane %v796_v26, 1  ;;  %2037 = vmatpush3.bf16.msra.mxu1 %v2127_v50 }
  0x45   : > { %810 = vrot.lane.b32.xlu0 %v2506_v27, %s2175_s11  ;;  %v848_v17 = vsel %vm601_vm4, %v843_v13, %v847_v12  ;;  %v794_v43 = vor.u32 %v793_v36, %v789_v8  ;;  %v868_v46 = vsel %vm730_vm3, %v866_v37, %v867_v42 }
  0x46   : > { %704 = vrot.lane.b32.xlu1 %v2473_v60, %s2175_s11 }
  0x47   : > { %v2624_v47 = vsel %vm601_vm4, %v794_v43, %v798_v44 }
  0x49   : > { %827 = vrot.lane.b32.xlu0 %v2489_v7, %s2173_s14 }
  0x4a   : > { %761 = vrot.lane.b32.xlu1 %v2412_v22, %s2173_s14  ;;  %v803_v22 = vsel %vm730_vm3, %v801_v9, %v802_v10 }
  0x4b   : > { %2028 = vmatprep.mubr.msk.bf16.mxu1 %vm869_vm5, %v803_v22 }
  0x4c   : > { %2029 = vmatmul.mubr.msk.bf16.gmra.mrb[12].mxu1 %vm869_vm5, %v868_v46 }
  0x4d   : > { %855 = vrot.lane.b32.xlu0 %v2558_v3, %s2174_s19 }
  0x4e   : > { %778 = vrot.lane.b32.xlu1 %v2331_v39, %s2174_s19 }
  0x51   : > { %812 = vrot.lane.b32.xlu0 %v748_v51, %s2175_s11 }
  0x52   : > { %706 = vrot.lane.b32.xlu1 %v2503_v25, %s2175_s11 }
  0x55   : > { %829 = vrot.lane.b32.xlu0 %v2513_v33, %s2173_s14 }
  0x56   : > { %763 = vrot.lane.b32.xlu1 %v2506_v27, %s2173_s14  ;;  %v692_v27 = vor.u32 %v691_v29, %v687_v23 }
  0x58   : > { %v2604_v32 = vsel %vm601_vm4, %v692_v27, %v696_v31 }
  0x59   : > { %857 = vrot.lane.b32.xlu0 %v2588_v20, %s2174_s19 }
  0x5a   : > { %780 = vrot.lane.b32.xlu1 %v2489_v7, %s2174_s19 }
  0x5d   : > { %814 = vrot.lane.b32.xlu0 %v2536_v57, %s2175_s11 }
  0x5e   : > { %708 = vrot.lane.b32.xlu1 %v2558_v3, %s2175_s11 }
  0x61   : > { %831 = vrot.lane.b32.xlu0 %v2551_v63, %s2173_s14 }
  0x62   : > { %765 = vrot.lane.b32.xlu1 %v748_v51, %s2173_s14 }
  0x65   : > { %859 = vrot.lane.b32.xlu0 %v2604_v32, %s2174_s19 }
  0x66   : > { %782 = vrot.lane.b32.xlu1 %v2513_v33, %s2174_s19 }
  0x69   : > { %816 = vrot.lane.b32.xlu0 %v754_v15, %s2175_s11 }
  0x6a   : > { %710 = vrot.lane.b32.xlu1 %v2588_v20, %s2175_s11 }
  0x6d   : > { %833 = vrot.lane.b32.xlu0 %v2563_v5, %s2173_s14 }
  0x6e   : > { %767 = vrot.lane.b32.xlu1 %v2536_v57, %s2173_s14 }
  0x71   : > { %861 = vrot.lane.b32.xlu0 %v2624_v47, %s2174_s19 }
  0x72   : > { %784 = vrot.lane.b32.xlu1 %v2551_v63, %s2174_s19 }
  0x75   : > { %818 = vrot.lane.b32.xlu0 %v803_v22, %s2175_s11 }
  0x76   : > { %712 = vrot.lane.b32.xlu1 %v2604_v32, %s2175_s11 }
  0x79   : > { %835 = vrot.lane.b32.xlu0 %v2545_v62, %s2173_s14 }
  0x7a   : > { %769 = vrot.lane.b32.xlu1 %v754_v15, %s2173_s14  ;;  %s1802_s14 = sshll.u32 %s441_s9, 2 }
  0x7b   : > { %s2780_s18 = scalar_lea.vmem %s2812_s7, %s1802_s14 }
  0x7d   : > { %863 = vrot.lane.b32.xlu0 %v848_v17, %s2174_s19 }
  0x7e   : > { %786 = vrot.lane.b32.xlu1 %v2563_v5, %s2174_s19 }
  0x93   : > { %v824_v51 = vpop.permute.xlu0 %823 }
  0x94   : > { %v822_v52 = vpop.permute.xlu1 %821 }
  0x97   : > { %v826_v53 = vpop.permute.xlu0 %825 }
  0x98   : > { %v773_v54 = vpop.permute.xlu1 %772 }
  0x9b   : > { %v805_v55 = vpop.permute.xlu0 %804 }
  0x9c   : > { %v775_v56 = vpop.permute.xlu1 %774  ;;  %v930_v61 = vsel %vm869_vm5, %v2419_v28, %v805_v55 }
  0x9d   : > { %v953_v1 = vsel %vm886_vm6, %v930_v61, %v822_v52 }
  0x9f   : > { %v807_v57 = vpop.permute.xlu0 %806 }
  0xa0   : > { %v758_v58 = vpop.permute.xlu1 %757  ;;  %v933_v9 = vsel %vm869_vm5, %v2451_v45, %v807_v57 }
  0xa1   : > { %v955_v14 = vsel %vm886_vm6, %v933_v9, %v824_v51 }
  0xa3   : > { %v809_v59 = vpop.permute.xlu0 %808 }
  0xa4   : > { %v701_v62 = vpop.permute.xlu1 %700  ;;  %v936_v45 = vsel %vm869_vm5, %v2473_v60, %v809_v59 }
  0xa5   : > { %v873_v16 = vsel %vm869_vm5, %v2335_v40, %v701_v62  ;;  %v957_v21 = vsel %vm886_vm6, %v936_v45, %v826_v53 }
  0xa7   : > { %v850_v0 = vpop.permute.xlu0 %849 }
  0xa8   : > { %v703_v2 = vpop.permute.xlu1 %702  ;;  %v969_v4 = vsel %vm903_vm7, %v953_v1, %v850_v0 }
  0xa9   : > { %1199 = vmatprep.mubr.bf16.mxu0 %v969_v4  ;;  %v875_v27 = vsel %vm869_vm5, %v2319_v38, %v703_v2 }
  0xab   : > { %v852_v5 = vpop.permute.xlu0 %851 }
  0xac   : > { %v756_v6 = vpop.permute.xlu1 %755  ;;  %v972_v24 = vsel %vm903_vm7, %v955_v14, %v852_v5 }
  0xaf   : > { %v699_v10 = vpop.permute.xlu0 %698 }
  0xb0   : > { %v760_v11 = vpop.permute.xlu1 %759  ;;  %v871_v28 = vsel %vm869_vm5, %v2442_v41, %v699_v10  ;;  %v890_v41 = vsel %vm886_vm6, %v873_v16, %v758_v58 }
  0xb1   : > { %v888_v12 = vsel %vm886_vm6, %v871_v28, %v756_v6  ;;  %v908_v19 = vsel %vm903_vm7, %v890_v41, %v775_v56  ;;  %v892_v60 = vsel %vm886_vm6, %v875_v27, %v760_v11  ;;  %v2131_v27 = vld [vmem:[%s2810_s5 + $0x30] sm:$0xff]  }
  0xb2   : > { %v905_v13 = vsel %vm903_vm7, %v888_v12, %v773_v54 }
  0xb3   : > { %1200 = vmatmul.mubr.bf16.vlgmr.msra.gmra.mrb[0].mxu0 %v905_v13  ;;  %v854_v15 = vpop.permute.xlu0 %853 }
  0xb4   : > { %v777_v22 = vpop.permute.xlu1 %776  ;;  %1207 = vmatprep.mubr.bf16.mxu0 %v972_v24  ;;  %v975_v29 = vsel %vm903_vm7, %v957_v21, %v854_v15 }
  0xb5   : > { %v911_v36 = vsel %vm903_vm7, %v892_v60, %v777_v22  ;;  %v2132_v60 = vld [vmem:[%s2810_s5 + $0x38] sm:$0xff]  }
  0xb7   : > { %v811_v17 = vpop.permute.xlu0 %810 }
  0xb8   : > { %v705_v18 = vpop.permute.xlu1 %704  ;;  %v939_v35 = vsel %vm869_vm5, %v2503_v25, %v811_v17 }
  0xb9   : > { %v877_v38 = vsel %vm869_vm5, %v2305_v34, %v705_v18 }
  0xbb   : > { %1208 = vmatmul.mubr.bf16.gmra.mrb[4].mxu0 %v908_v19  ;;  %v828_v23 = vpop.permute.xlu0 %827 }
  0xbc   : > { %v762_v30 = vpop.permute.xlu1 %761  ;;  %1215 = vmatprep.mubr.bf16.mxu0 %v975_v29  ;;  %v959_v8 = vsel %vm886_vm6, %v939_v35, %v828_v23  ;;  %v2128_v23 = vld [vmem:[%s2810_s5 + $0x18] sm:$0xff]  }
  0xbd   : > { %v894_v46 = vsel %vm886_vm6, %v877_v38, %v762_v30  ;;  %2038 = vmatprep.subr.bf16.mxu1 %v2128_v23 }
  0xbe   : > { %2039 = vmatpush3.bf16.msra.mxu1 %v2128_v23 }
  0xbf   : > { %v856_v40 = vpop.permute.xlu0 %855 }
  0xc0   : > { %v779_v31 = vpop.permute.xlu1 %778  ;;  %v978_v37 = vsel %vm903_vm7, %v959_v8, %v856_v40 }
  0xc1   : > { %v914_v48 = vsel %vm903_vm7, %v894_v46, %v779_v31 }
  0xc3   : > { %1216 = vmatmul.mubr.bf16.gmra.mrb[8].mxu0 %v911_v36  ;;  %v813_v26 = vpop.permute.xlu0 %812 }
  0xc4   : > { %v707_v42 = vpop.permute.xlu1 %706  ;;  %1223 = vmatprep.mubr.bf16.mxu0 %v978_v37  ;;  %v942_v25 = vsel %vm869_vm5, %v2558_v3, %v813_v26 }
  0xc5   : > { %v879_v34 = vsel %vm869_vm5, %v2331_v39, %v707_v42 }
  0xc7   : > { %v830_v43 = vpop.permute.xlu0 %829 }
  0xc8   : > { %v764_v44 = vpop.permute.xlu1 %763  ;;  %v961_v49 = vsel %vm886_vm6, %v942_v25, %v830_v43 }
  0xc9   : > { %v896_v55 = vsel %vm886_vm6, %v879_v34, %v764_v44 }
  0xcb   : > { %1224 = vmatmul.mubr.bf16.gmra.mrb[12].mxu0 %v914_v48  ;;  %v858_v50 = vpop.permute.xlu0 %857 }
  0xcc   : > { %v781_v51 = vpop.permute.xlu1 %780  ;;  %v981_v52 = vsel %vm903_vm7, %v961_v49, %v858_v50 }
  0xcd   : > { %1231 = vmatprep.mubr.bf16.mxu0 %v981_v52  ;;  %v917_v56 = vsel %vm903_vm7, %v896_v55, %v781_v51  ;;  %v2746_v51 = vld [vmem:[%s2809_s4] ss:$0 sm:$0xff] }
  0xcf   : > { %v815_v53 = vpop.permute.xlu0 %814 }
  0xd0   : > { %v709_v54 = vpop.permute.xlu1 %708  ;;  %v945_v58 = vsel %vm869_vm5, %v2588_v20, %v815_v53 }
  0xd1   : > { %v881_v62 = vsel %vm869_vm5, %v2489_v7, %v709_v54 }
  0xd3   : > { %1232 = vmatmul.mubr.bf16.gmra.mrb[16].mxu0 %v917_v56  ;;  %v832_v3 = vpop.permute.xlu0 %831 }
  0xd4   : > { %v766_v57 = vpop.permute.xlu1 %765  ;;  %v963_v59 = vsel %vm886_vm6, %v945_v58, %v832_v3 }
  0xd5   : > { %v898_v1 = vsel %vm886_vm6, %v881_v62, %v766_v57 }
  0xd7   : > { %v860_v61 = vpop.permute.xlu0 %859 }
  0xd8   : > { %v783_v0 = vpop.permute.xlu1 %782  ;;  %v984_v39 = vsel %vm903_vm7, %v963_v59, %v860_v61 }
  0xd9   : > { %1239 = vmatprep.mubr.bf16.mxu0 %v984_v39  ;;  %v920_v2 = vsel %vm903_vm7, %v898_v1, %v783_v0 }
  0xdb   : > { %1240 = vmatmul.mubr.bf16.gmra.mrb[20].mxu0 %v920_v2  ;;  %v817_v4 = vpop.permute.xlu0 %816 }
  0xdc   : > { %v711_v5 = vpop.permute.xlu1 %710  ;;  %v948_v20 = vsel %vm869_vm5, %v2604_v32, %v817_v4 }
  0xdd   : > { %v883_v10 = vsel %vm869_vm5, %v2513_v33, %v711_v5 }
  0xdf   : > { %v834_v6 = vpop.permute.xlu0 %833 }
  0xe0   : > { %v768_v9 = vpop.permute.xlu1 %767  ;;  %v965_v7 = vsel %vm886_vm6, %v948_v20, %v834_v6 }
  0xe1   : > { %v900_v28 = vsel %vm886_vm6, %v883_v10, %v768_v9 }
  0xe3   : > { %v862_v11 = vpop.permute.xlu0 %861 }
  0xe4   : > { %v785_v12 = vpop.permute.xlu1 %784  ;;  %v987_v13 = vsel %vm903_vm7, %v965_v7, %v862_v11 }
  0xe5   : > { %1247 = vmatprep.mubr.bf16.mxu0 %v987_v13  ;;  %v923_v14 = vsel %vm903_vm7, %v900_v28, %v785_v12 }
  0xe6   : > { %1248 = vmatmul.mubr.bf16.gmra.mrb[24].mxu0 %v923_v14 }
  0xe7   : > { %v819_v15 = vpop.permute.xlu0 %818 }
  0xe8   : > { %v713_v24 = vpop.permute.xlu1 %712  ;;  %v951_v32 = vsel %vm869_vm5, %v2624_v47, %v819_v15  ;;  %v2130_v47 = vld [vmem:[%s2810_s5 + $0x28] sm:$0xff]  }
  0xe9   : > { %v885_v33 = vsel %vm869_vm5, %v2551_v63, %v713_v24  ;;  %v2129_v63 = vld [vmem:[%s2810_s5 + $0x20] sm:$0xff]  }
  0xea   : > { %2040 = vmatprep.subr.bf16.mxu1 %v2129_v63 }
  0xeb   : > { %v836_v16 = vpop.permute.xlu0 %835  ;;  %2041 = vmatpush3.bf16.msra.mxu1 %v2129_v63 }
  0xec   : > { %v770_v22 = vpop.permute.xlu1 %769  ;;  %v967_v45 = vsel %vm886_vm6, %v951_v32, %v836_v16  ;;  %2042 = vmatprep.subr.bf16.mxu1 %v2130_v47 }
  0xed   : > { %v902_v41 = vsel %vm886_vm6, %v885_v33, %v770_v22 }
  0xef   : > { %v864_v17 = vpop.permute.xlu0 %863  ;;  %2043 = vmatpush3.bf16.msra.mxu1 %v2130_v47 }
  0xf0   : > { %v787_v18 = vpop.permute.xlu1 %786  ;;  %v990_v19 = vsel %vm903_vm7, %v967_v45, %v864_v17  ;;  %2044 = vmatprep.subr.bf16.mxu1 %v2131_v27 }
  0xf1   : > { %1255 = vmatprep.mubr.bf16.mxu0 %v990_v19  ;;  %v926_v21 = vsel %vm903_vm7, %v902_v41, %v787_v18 }
  0xf2   : > { %1256 = vmatmul.mubr.bf16.gmra.mrb[28].mxu0 %v926_v21 }
  0xf3   : > { %2045 = vmatpush3.bf16.msra.mxu1 %v2131_v27 }
  0xf4   : > { %2046 = vmatprep.subr.bf16.mxu1 %v2132_v60 }
  0xf7   : > { %2047 = vmatpush3.bf16.msra.mxu1 %v2132_v60 }
 0x105   : > { %v2018_v29 = vpop.f32.mrb[0].mxu1 }
 0x106   : > { %v1298_v30 = vpop.f32.mrb[1].mxu1 }
 0x107   : > { %v2019_v40 = vpop.f32.mrb[2].mxu1 }
 0x108   : > { %v1301_v31 = vpop.f32.mrb[3].mxu1 }
 0x10d   : > { %v2022_v35 = vpop.f32.mrb[4].mxu1 }
 0x10e   : > { %v1314_v8 = vpop.f32.mrb[5].mxu1 }
 0x10f   : > { %v2023_v36 = vpop.f32.mrb[6].mxu1 }
 0x110   : > { %v1317_v26 = vpop.f32.mrb[7].mxu1 }
 0x115   : > { %v2727_v37 = vpop.f32.mrb[8].mxu1 }
 0x116   : > { %v2729_v42 = vpop.f32.mrb[9].mxu1 }
 0x117   : > { %v2731_v43 = vpop.f32.mrb[10].mxu1 }
 0x118   : > { %v2733_v38 = vpop.f32.mrb[11].mxu1 }
 0x11f   : > { %v2735_v44 = vpop.f32.mrb[12].mxu1 }
 0x120   : > { %v2737_v46 = vpop.f32.mrb[13].mxu1 }
 0x121   : > { %v2739_v25 = vpop.f32.mrb[14].mxu1 }
 0x122   : > { %v2741_v48 = vpop.f32.mrb[15].mxu1 }
 0x186   : > { %v1938_v49 = vpop.f32.mrb[0].mxu0 }
 0x187   : > { %v1939_v50 = vpop.f32.mrb[1].mxu0 }
 0x188   : > { %v1940_v52 = vadd.f32 %v1939_v50, %v1938_v49  ;;  %v1941_v53 = vpop.f32.mrb[2].mxu0 }
 0x189   : > { %v1942_v34 = vpop.f32.mrb[3].mxu0 }
 0x18a   : > { %v1943_v54 = vadd.f32 %v1942_v34, %v1941_v53  ;;  %v1202_v55 = vadd.f32 %v1940_v52, %v2746_v51 }
 0x18c   : > { %v1299_v56 = vadd.f32 %v1298_v30, %v1202_v55  ;;  %v1205_v3 = vadd.f32 %v1943_v54, %v2746_v51 }
 0x18e   : > { %v1302_v57 = vadd.f32 %v1301_v31, %v1205_v3  ;;  %v1944_v58 = vpop.f32.mrb[4].mxu0  ;;  %v1361_v61 = vmax.f32 %v1299_v56, 0.0 }
 0x18f   : > { %v1945_v59 = vpop.f32.mrb[5].mxu0 }
 0x190   : > { %v1362_v62 = vmax.f32 %v1302_v57, 0.0  ;;  %v1946_v0 = vadd.f32 %v1945_v59, %v1944_v58  ;;  %v1947_v39 = vpop.f32.mrb[6].mxu0 }
 0x191   : > { %v1948_v1 = vpop.f32.mrb[7].mxu0 }
 0x192   : > { %v1377_v2 = vpack.c.bf16 %v1362_v62, %v1361_v61  ;;  %v1210_v4 = vadd.f32 %v1946_v0, %v2746_v51  ;;  %v1949_v5 = vadd.f32 %v1948_v1, %v1947_v39 }
 0x194   : > { %v1307_v6 = vadd.f32 %v2018_v29, %v1210_v4  ;;  %v1213_v9 = vadd.f32 %v1949_v5, %v2746_v51  ;;  %2048 = vmatprep.mubr.bf16.mxu1 %v1377_v2 }
 0x196   : > { %v1310_v20 = vadd.f32 %v2019_v40, %v1213_v9  ;;  %v1950_v10 = vpop.f32.mrb[8].mxu0  ;;  %v1363_v11 = vmax.f32 %v1307_v6, 0.0 }
 0x197   : > { %v1951_v7 = vpop.f32.mrb[9].mxu0 }
 0x198   : > { %v1364_v28 = vmax.f32 %v1310_v20, 0.0  ;;  %v1952_v12 = vadd.f32 %v1951_v7, %v1950_v10  ;;  %v1953_v13 = vpop.f32.mrb[10].mxu0 }
 0x199   : > { %v1954_v14 = vpop.f32.mrb[11].mxu0 }
 0x19a   : > { %v1378_v15 = vpack.c.bf16 %v1364_v28, %v1363_v11  ;;  %v1955_v24 = vadd.f32 %v1954_v14, %v1953_v13  ;;  %v1218_v16 = vadd.f32 %v1952_v12, %v2746_v51 }
 0x19c   : > { %v1315_v22 = vadd.f32 %v1314_v8, %v1218_v16  ;;  %2049 = vmatmul.mubr.bf16.vlgmr.msra.gmra.mrb[16].mxu1 %v1378_v15  ;;  %v1221_v32 = vadd.f32 %v1955_v24, %v2746_v51 }
 0x19e   : > { %v1318_v33 = vadd.f32 %v1317_v26, %v1221_v32  ;;  %v1956_v45 = vpop.f32.mrb[12].mxu0  ;;  %v1365_v41 = vmax.f32 %v1315_v22, 0.0 }
 0x19f   : > { %v1957_v17 = vpop.f32.mrb[13].mxu0 }
 0x1a0   : > { %v1366_v18 = vmax.f32 %v1318_v33, 0.0  ;;  %v1958_v19 = vadd.f32 %v1957_v17, %v1956_v45  ;;  %v1959_v21 = vpop.f32.mrb[14].mxu0 }
 0x1a1   : > { %v1960_v23 = vpop.f32.mrb[15].mxu0 }
 0x1a2   : > { %v1379_v63 = vpack.c.bf16 %v1366_v18, %v1365_v41  ;;  %v1226_v47 = vadd.f32 %v1958_v19, %v2746_v51  ;;  %v1961_v29 = vadd.f32 %v1960_v23, %v1959_v21 }
 0x1a4   : > { %v1323_v30 = vadd.f32 %v2022_v35, %v1226_v47  ;;  %v1229_v40 = vadd.f32 %v1961_v29, %v2746_v51  ;;  %2052 = vmatprep.mubr.bf16.mxu1 %v1379_v63  ;;  %v1830_v47 = vld [vmem:[%s2811_s6] ss:$0 sm:$0xff] }
 0x1a6   : > { %v1326_v27 = vadd.f32 %v2023_v36, %v1229_v40  ;;  %v1962_v31 = vpop.f32.mrb[16].mxu0  ;;  %v1367_v8 = vmax.f32 %v1323_v30, 0.0 }
 0x1a7   : > { %v1963_v60 = vpop.f32.mrb[17].mxu0 }
 0x1a8   : > { %v1368_v26 = vmax.f32 %v1326_v27, 0.0  ;;  %v1964_v49 = vadd.f32 %v1963_v60, %v1962_v31  ;;  %v1965_v50 = vpop.f32.mrb[18].mxu0 }
 0x1a9   : > { %v1966_v52 = vpop.f32.mrb[19].mxu0 }
 0x1aa   : > { %v1967_v53 = vadd.f32 %v1966_v52, %v1965_v50  ;;  %v1234_v34 = vadd.f32 %v1964_v49, %v2746_v51  ;;  %v1380_v54 = vpack.c.bf16 %v1368_v26, %v1367_v8 }
 0x1ac   : > { %v1331_v55 = vadd.f32 %v2729_v42, %v1234_v34  ;;  %2053 = vmatmul.mubr.bf16.gmra.mrb[20].mxu1 %v1380_v54  ;;  %v1237_v35 = vadd.f32 %v1967_v53, %v2746_v51 }
 0x1ae   : > { %v1334_v56 = vadd.f32 %v2733_v38, %v1237_v35  ;;  %v1968_v3 = vpop.f32.mrb[20].mxu0  ;;  %v1369_v57 = vmax.f32 %v1331_v55, 0.0 }
 0x1af   : > { %v1969_v36 = vpop.f32.mrb[21].mxu0 }
 0x1b0   : > { %v1370_v58 = vmax.f32 %v1334_v56, 0.0  ;;  %v1970_v59 = vadd.f32 %v1969_v36, %v1968_v3  ;;  %v1971_v61 = vpop.f32.mrb[22].mxu0 }
 0x1b1   : > { %v1972_v62 = vpop.f32.mrb[23].mxu0 }
 0x1b2   : > { %v1381_v0 = vpack.c.bf16 %v1370_v58, %v1369_v57  ;;  %v1242_v39 = vadd.f32 %v1970_v59, %v2746_v51  ;;  %v1973_v1 = vadd.f32 %v1972_v62, %v1971_v61 }
 0x1b4   : > { %v1339_v2 = vadd.f32 %v2727_v37, %v1242_v39  ;;  %v1245_v42 = vadd.f32 %v1973_v1, %v2746_v51  ;;  %2056 = vmatprep.mubr.bf16.mxu1 %v1381_v0 }
 0x1b6   : > { %v1342_v4 = vadd.f32 %v2731_v43, %v1245_v42  ;;  %v1371_v5 = vmax.f32 %v1339_v2, 0.0 }
 0x1b8   : > { %v1372_v38 = vmax.f32 %v1342_v4, 0.0 }
 0x1b9   : > { %v1974_v6 = vpop.f32.mrb[24].mxu0 }
 0x1ba   : > { %v1975_v9 = vpop.f32.mrb[25].mxu0  ;;  %v1382_v20 = vpack.c.bf16 %v1372_v38, %v1371_v5 }
 0x1bb   : > { %v1976_v10 = vadd.f32 %v1975_v9, %v1974_v6  ;;  %v1977_v7 = vpop.f32.mrb[26].mxu0 }
 0x1bc   : > { %v1978_v11 = vpop.f32.mrb[27].mxu0  ;;  %2057 = vmatmul.mubr.bf16.gmra.mrb[24].mxu1 %v1382_v20 }
 0x1bd   : > { %v1979_v28 = vadd.f32 %v1978_v11, %v1977_v7  ;;  %v1250_v12 = vadd.f32 %v1976_v10, %v2746_v51 }
 0x1bf   : > { %v1347_v13 = vadd.f32 %v2737_v46, %v1250_v12  ;;  %v1253_v37 = vadd.f32 %v1979_v28, %v2746_v51 }
 0x1c1   : > { %v1350_v14 = vadd.f32 %v2741_v48, %v1253_v37  ;;  %v1373_v15 = vmax.f32 %v1347_v13, 0.0 }
 0x1c3   : > { %v1374_v43 = vmax.f32 %v1350_v14, 0.0 }
 0x1c5   : > { %v1383_v24 = vpack.c.bf16 %v1374_v43, %v1373_v15  ;;  %v1980_v16 = vpop.f32.mrb[28].mxu0 }
 0x1c6   : > { %v1981_v22 = vpop.f32.mrb[29].mxu0 }
 0x1c7   : > { %v1982_v32 = vadd.f32 %v1981_v22, %v1980_v16  ;;  %v1983_v33 = vpop.f32.mrb[30].mxu0  ;;  %2060 = vmatprep.mubr.bf16.mxu1 %v1383_v24 }
 0x1c8   : > { %v1984_v45 = vpop.f32.mrb[31].mxu0 }
 0x1c9   : > { %v1258_v17 = vadd.f32 %v1982_v32, %v2746_v51  ;;  %v1985_v41 = vadd.f32 %v1984_v45, %v1983_v33 }
 0x1cb   : > { %v1355_v46 = vadd.f32 %v2735_v44, %v1258_v17  ;;  %v1261_v18 = vadd.f32 %v1985_v41, %v2746_v51 }
 0x1cd   : > { %v1358_v48 = vadd.f32 %v2739_v25, %v1261_v18  ;;  %v1375_v19 = vmax.f32 %v1355_v46, 0.0 }
 0x1cf   : > { %v1376_v21 = vmax.f32 %v1358_v48, 0.0 }
 0x1d1   : > { %v1384_v23 = vpack.c.bf16 %v1376_v21, %v1375_v19 }
 0x1d3   : > { %2061 = vmatmul.mubr.bf16.gmra.mrb[28].mxu1 %v1384_v23 }
 0x26f   : > { %v2050_v63 = vpop.f32.mrb[16].mxu1 }
 0x270   : > { %v1490_v29 = vpop.f32.mrb[17].mxu1  ;;  %v1499_v30 = vadd.f32 %v2050_v63, %v1830_v47 }
 0x271   : > { %v2051_v44 = vpop.f32.mrb[18].mxu1  ;;  %v1491_v25 = vadd.f32 %v1830_v47, %v1490_v29 }
 0x272   : > { %v1502_v51 = vadd.f32 %v2051_v44, %v1830_v47  ;;  %v1493_v40 = vpop.f32.mrb[19].mxu1 }
 0x273   : > { %v1494_v27 = vadd.f32 %v1830_v47, %v1493_v40 }
 0x274   : > { %v1883_v31 = vpack.c.bf16 %v1502_v51, %v1499_v30 }
 0x275   : > { %v1878_v60 = vpack.c.bf16 %v1494_v27, %v1491_v25 }
 0x276   : > { %1915 = vst [vmem:[%s2780_s18 + $0x8] sm:$0xff] %v1883_v31  }
 0x277   : > { %1879 = vst [vmem:[%s2780_s18] sm:$0xff] %v1878_v60  }
 0x27f   : > { %v2054_v8 = vpop.f32.mrb[20].mxu1 }
 0x280   : > { %v1506_v26 = vpop.f32.mrb[21].mxu1  ;;  %v1515_v50 = vadd.f32 %v2054_v8, %v1830_v47 }
 0x281   : > { %v2055_v49 = vpop.f32.mrb[22].mxu1  ;;  %v1507_v34 = vadd.f32 %v1830_v47, %v1506_v26 }
 0x282   : > { %v1518_v52 = vadd.f32 %v2055_v49, %v1830_v47  ;;  %v1509_v53 = vpop.f32.mrb[23].mxu1 }
 0x283   : > { %v1510_v54 = vadd.f32 %v1830_v47, %v1509_v53 }
 0x284   : > { %v1893_v55 = vpack.c.bf16 %v1518_v52, %v1515_v50 }
 0x285   : > { %v1888_v35 = vpack.c.bf16 %v1510_v54, %v1507_v34 }
 0x286   : > { %1917 = vst [vmem:[%s2780_s18 + $0x18] sm:$0xff] %v1893_v55  }
 0x287   : > { %1916 = vst [vmem:[%s2780_s18 + $0x10] sm:$0xff] %v1888_v35  }
 0x28f   : > { %v2058_v56 = vpop.f32.mrb[24].mxu1 }
 0x290   : > { %v1522_v3 = vpop.f32.mrb[25].mxu1  ;;  %v1531_v57 = vadd.f32 %v2058_v56, %v1830_v47 }
 0x291   : > { %v2059_v36 = vpop.f32.mrb[26].mxu1  ;;  %v1523_v61 = vadd.f32 %v1830_v47, %v1522_v3 }
 0x292   : > { %v1534_v58 = vadd.f32 %v2059_v36, %v1830_v47  ;;  %v1525_v59 = vpop.f32.mrb[27].mxu1 }
 0x293   : > { %v1526_v62 = vadd.f32 %v1830_v47, %v1525_v59 }
 0x294   : > { %v1903_v0 = vpack.c.bf16 %v1534_v58, %v1531_v57 }
 0x295   : > { %v1898_v39 = vpack.c.bf16 %v1526_v62, %v1523_v61 }
 0x296   : > { %1919 = vst [vmem:[%s2780_s18 + $0x28] sm:$0xff] %v1903_v0  }
 0x297   : > { %1918 = vst [vmem:[%s2780_s18 + $0x20] sm:$0xff] %v1898_v39  }
 0x2a6   : > { %v2062_v1 = vpop.f32.mrb[28].mxu1 }
 0x2a7   : > { %v1538_v2 = vpop.f32.mrb[29].mxu1  ;;  %v1547_v4 = vadd.f32 %v2062_v1, %v1830_v47 }
 0x2a8   : > { %v2063_v42 = vpop.f32.mrb[30].mxu1  ;;  %v1539_v6 = vadd.f32 %v1830_v47, %v1538_v2 }
 0x2a9   : > { %v1550_v5 = vadd.f32 %v2063_v42, %v1830_v47  ;;  %v1541_v38 = vpop.f32.mrb[31].mxu1 }
 0x2aa   : > { %v1542_v9 = vadd.f32 %v1830_v47, %v1541_v38 }
 0x2ab   : > { %v1913_v20 = vpack.c.bf16 %v1550_v5, %v1547_v4 }
 0x2ac   : > { %v1908_v10 = vpack.c.bf16 %v1542_v9, %v1539_v6 }
 0x2ad   : > { %1921 = vst [vmem:[%s2780_s18 + $0x38] sm:$0xff] %v1913_v20  }
 0x2ae   : > { %1920 = vst [vmem:[%s2780_s18 + $0x30] sm:$0xff] %v1908_v10  }
 0x2af PF: > { %s17_s28 = sadd.s32 1, %s2171_s28   ;;  %s2816_s24 = smov %s2163_s26 }
 0x2b0   : > { %p14_p13 = scmp.ge.s32.totalorder %s17_s28, 6   ;;  %s2817_s25 = smov %s2167_s27 }
 0x2b1   : > { %s2818_s26 = smov %s2821_s29  ;;  %s2819_s27 = smov %s2825_s30 }
 0x2b2   :  { %16 = sbr.rel (!%p14_p13) target bundleno = 3 (0x3), region = 84 }

</bundles_post_ra>
